<compile_context>
chip_gen: v7x
topology: tpu7x:2x2x1
jax: 0.10.0
libtpu: 0.0.40
codegen_flags: <defaults>
</compile_context>

<pallas_src>
import functools
import math
from functools import partial

import jax
import jax.numpy as jnp
from jax.experimental import pallas as pl
from jax.experimental.pallas import tpu as pltpu


# ------------------------------ fused kernel --------------------------------

def _fused_attention_kernel(x_ref, wqkv_ref, wproj_ref, bproj_ref, o_ref, *,
                            num_heads):
    """Per-batch block: QKV projection + MHA + output projection, all in VMEM.

    x:     (1, L, C)  bf16
    wqkv:  (C, 3C)    bf16   (q-columns pre-scaled by head_dim**-0.5)
    wproj: (C, C)     bf16   (== PyTorch proj.weight.T)
    bproj: (1, C)     f32
    o:     (1, L, C)  f32
    """
    H = num_heads
    x = x_ref[0]                                            # (L, C) bf16
    L, C = x.shape
    Dh = C // H

    # (1) fused QKV projection: one (L,C)@(C,3C) MXU matmul, f32 accumulation.
    qkv = jnp.dot(x, wqkv_ref[...], preferred_element_type=jnp.float32)
    qkv = qkv.astype(jnp.bfloat16)                          # (L, 3C)

    # (2) head split in-VMEM via static lane slices -> (H, L, Dh).
    # TODO(synk): at real Dh (64/72) prefer an in-register einshape head split
    # over sub-128 lane slices to keep loads lane-dense.
    def split_heads(base):
        return jnp.stack(
            [qkv[:, base + h * Dh: base + (h + 1) * Dh] for h in range(H)])

    q = split_heads(0)          # already scaled (folded into w_qkv on host)
    k = split_heads(C)
    v = split_heads(2 * C)

    # (3) scores + softmax, batched over heads (single batched MXU stream).
    s = jnp.einsum('hqd,hkd->hqk', q, k,
                   preferred_element_type=jnp.float32)      # (H, L, L) f32
    s = s - jnp.max(s, axis=-1, keepdims=True)
    p = jnp.exp(s)                                          # f32 EUP
    inv_l = pl.reciprocal(jnp.sum(p, axis=-1, keepdims=True),
                          approx=True)                      # (H, L, 1), EUP

    # (4) per-head context; normalize AFTER the PV matmul (H*L*Dh multiplies
    #     instead of H*L*L).
    ctx = jnp.einsum('hqk,hkd->hqd', p.astype(jnp.bfloat16), v,
                     preferred_element_type=jnp.float32)    # (H, L, Dh) f32
    ctx = ctx * inv_l

    # (5) relayout (H, L, Dh) -> (L, C) in VMEM (static lane-offset concat),
    #     then ONE full-contraction-depth (L,C)@(C,C) projection matmul.
    ctx_flat = jnp.concatenate([ctx[h] for h in range(H)], axis=-1)  # (L, C)
    out = jnp.dot(ctx_flat.astype(jnp.bfloat16), wproj_ref[...],
                  preferred_element_type=jnp.float32)       # (L, C) f32
    o_ref[0] = out + bproj_ref[...]


# ------------- probe: single-buffered grid-invariant operands ----------------

def _probe_single_buffered_weights():
    """Check whether pipeline_mode=pl.Buffered(1) is accepted for a
    grid-invariant operand of a top-level pallas_call on this jax build."""
    try:
        def _copy(w_ref, o_ref):
            o_ref[...] = w_ref[...]

        probe = pl.pallas_call(
            _copy,
            out_shape=jax.ShapeDtypeStruct((8, 128), jnp.float32),
            grid=(1,),
            in_specs=[pl.BlockSpec((8, 128), lambda i: (0, 0),
                                   pipeline_mode=pl.Buffered(1))],
            out_specs=pl.BlockSpec((8, 128), lambda i: (0, 0)),
        )
        jax.jit(probe).lower(jnp.zeros((8, 128), jnp.float32)).compile()
        return True
    except Exception:  # any failure -> fall back to default double-buffering
        return False


_SINGLE_BUFFER_WEIGHTS_OK = _probe_single_buffered_weights()


# ------------------------------ forward wrapper ------------------------------

def attention_forward(params, x, num_heads):
    B, L, C = x.shape

    def invariant_spec(shape):
        # Grid-invariant operands (weights/bias): single-buffer when supported
        # to halve their VMEM footprint (v7x has 64 MiB VMEM vs 128 on
        # v5e/v6e); otherwise default buffering.
        index_map = lambda b, _nd=len(shape): (0,) * _nd
        if _SINGLE_BUFFER_WEIGHTS_OK:
            return pl.BlockSpec(shape, index_map, pipeline_mode=pl.Buffered(1))
        return pl.BlockSpec(shape, index_map)

    kernel = partial(_fused_attention_kernel, num_heads=num_heads)
    return pl.pallas_call(
        kernel,
        # Output kept f32 (module output dtype / verification); switch to bf16
        # if the downstream consumer is bf16 to halve HBM writeback.
        out_shape=jax.ShapeDtypeStruct((B, L, C), jnp.float32),
        grid=(B,),
        in_specs=[
            pl.BlockSpec((1, L, C), lambda b: (b, 0, 0)),
            invariant_spec(params['w_qkv'].shape),
            invariant_spec(params['w_proj'].shape),
            invariant_spec(params['b_proj'].shape),
        ],
        out_specs=pl.BlockSpec((1, L, C), lambda b: (b, 0, 0)),
        compiler_params=pltpu.CompilerParams(
            # Batch axis "parallel": both v7x TensorCores get work; on v5e
            # (single TC) this is a no-op and the grid stays coarse.
            dimension_semantics=("parallel",),
            # Toy shapes; at real UViT sizes re-derive per generation:
            # <= ~48-56 MiB with smaller Lq tiles on v7x (64 MiB VMEM),
            # ~96-100 MiB with 512-1024-row tiles on v5e/v6e (128 MiB VMEM).
            vmem_limit_bytes=48 << 20),
    )(x.astype(jnp.bfloat16), params['w_qkv'], params['w_proj'],
      params['b_proj'])


# ----------------------------- params & reference ----------------------------

def init_params(key, C, num_heads):
    H = num_heads
    Dh = C // H
    scale = Dh ** -0.5
    k1, k2, k3 = jax.random.split(key, 3)
    bound = 1.0 / math.sqrt(C)
    w_qkv = jax.random.uniform(k1, (C, 3 * C), jnp.float32, -bound, bound)
    w_proj = jax.random.uniform(k2, (C, C), jnp.float32, -bound, bound)
    b_proj = jax.random.uniform(k3, (C,), jnp.float32, -bound, bound)

    # Kernel params: (in, out) layout (== PyTorch weight.T), bf16 for the MXU.
    # The head scale is constant-folded into the q-columns of w_qkv once here
    # (one-time host fold -> no full-width (L, C) VPU multiply in the kernel).
    w_qkv_scaled = w_qkv.at[:, :C].multiply(scale)
    params = dict(
        w_qkv=w_qkv_scaled.astype(jnp.bfloat16),
        w_proj=w_proj.astype(jnp.bfloat16),
        b_proj=b_proj.reshape(1, C),
    )
    fp32 = dict(w_qkv=w_qkv, w_proj=w_proj, b_proj=b_proj)
    return params, fp32


def attention_ref(x, w_qkv, w_proj, b_proj, num_heads):
    # Pure-JAX f32 reference mirroring the PyTorch 'math' path.
    B, L, C = x.shape
    H = num_heads
    Dh = C // H
    qkv = x @ w_qkv
    q, k, v = qkv[..., :C], qkv[..., C:2 * C], qkv[..., 2 * C:]
    q = q.reshape(B, L, H, Dh).transpose(0, 2, 1, 3)
    k = k.reshape(B, L, H, Dh).transpose(0, 2, 1, 3)
    v = v.reshape(B, L, H, Dh).transpose(0, 2, 1, 3)
    s = jnp.einsum('bhqd,bhkd->bhqk', q, k) * (Dh ** -0.5)
    p = jax.nn.softmax(s, axis=-1)
    ctx = jnp.einsum('bhqk,bhkd->bhqd', p, v)
    ctx = ctx.transpose(0, 2, 1, 3).reshape(B, L, C)
    return ctx @ w_proj + b_proj


# ----------------------------------- main ------------------------------------

if __name__ == '__main__':
    B, L, C, H = 2, 8, 32, 4   # batch=2, seq=8, hidden=32, heads=4 (Dh=8)

    key = jax.random.PRNGKey(0)
    k_param, k_x = jax.random.split(key)
    params, fp32 = init_params(k_param, C, H)
    x = jax.random.normal(k_x, (B, L, C), jnp.float32)

    fwd = jax.jit(partial(attention_forward, num_heads=H))
    out = jax.block_until_ready(fwd(params, x))

    assert out.shape == (B, L, C)
    assert bool(jnp.all(jnp.isfinite(out)))

    ref = attention_ref(x, fp32['w_qkv'], fp32['w_proj'], fp32['b_proj'], H)
    err = float(jnp.max(jnp.abs(out - ref)))
    assert err < 3e-2, f'max abs error vs f32 reference too large: {err}'

    print("KERNEL_OK")
</pallas_src>

<mosaic_0001>
module attributes {stable_mosaic.version = 11 : i64} {
  func.func @_fused_attention_kernel(%arg0: i32, %arg1: memref<1x8x32xbf16, #tpu.memory_space<vmem>>, %arg2: memref<32x96xbf16, #tpu.memory_space<vmem>>, %arg3: memref<32x32xbf16, #tpu.memory_space<vmem>>, %arg4: memref<1x32xf32, #tpu.memory_space<vmem>>, %arg5: memref<1x8x32xf32, #tpu.memory_space<vmem>>) attributes {dimension_semantics = [#tpu.dimension_semantics<parallel>], iteration_bounds = array<i64: 2>, scalar_prefetch = 0 : i64, scratch_operands = 0 : i64, tpu.core_type = #tpu.core_type<tc>, window_params = [{transform_indices = @transform_0, window_bounds = array<i64: 1, 8, 32>}, {pipeline_mode = #tpu.pipeline_mode<synchronous>, transform_indices = @transform_1, window_bounds = array<i64: 32, 96>}, {pipeline_mode = #tpu.pipeline_mode<synchronous>, transform_indices = @transform_2, window_bounds = array<i64: 32, 32>}, {pipeline_mode = #tpu.pipeline_mode<synchronous>, transform_indices = @transform_3, window_bounds = array<i64: 1, 32>}, {transform_indices = @transform_4, window_bounds = array<i64: 1, 8, 32>}]} {
    %c0 = arith.constant 0 : index
    %c0_0 = arith.constant 0 : index
    %c0_1 = arith.constant 0 : index
    %0 = vector.load %arg1[%c0, %c0_0, %c0_1] : memref<1x8x32xbf16, #tpu.memory_space<vmem>>, vector<1x8x32xbf16>
    %1 = vector.shape_cast %0 : vector<1x8x32xbf16> to vector<8x32xbf16>
    %c0_2 = arith.constant 0 : index
    %c0_3 = arith.constant 0 : index
    %2 = vector.load %arg2[%c0_2, %c0_3] : memref<32x96xbf16, #tpu.memory_space<vmem>>, vector<32x96xbf16>
    %cst = arith.constant dense<0.000000e+00> : vector<8x96xf32>
    %3 = tpu.matmul %1, %2, %cst {dimension_numbers = #tpu.dot_dimension_numbers<[1], [0], [0], [1], [0, 0, 1, 1], [], []>} : vector<8x32xbf16>, vector<32x96xbf16>, vector<8x96xf32> -> vector<8x96xf32>
    %4 = arith.truncf %3 : vector<8x96xf32> to vector<8x96xbf16>
    %5 = vector.extract_strided_slice %4 {offsets = [0, 0], sizes = [8, 8], strides = [1, 1]} : vector<8x96xbf16> to vector<8x8xbf16>
    %6 = vector.extract_strided_slice %4 {offsets = [0, 8], sizes = [8, 8], strides = [1, 1]} : vector<8x96xbf16> to vector<8x8xbf16>
    %7 = vector.extract_strided_slice %4 {offsets = [0, 16], sizes = [8, 8], strides = [1, 1]} : vector<8x96xbf16> to vector<8x8xbf16>
    %8 = vector.extract_strided_slice %4 {offsets = [0, 24], sizes = [8, 8], strides = [1, 1]} : vector<8x96xbf16> to vector<8x8xbf16>
    %9 = vector.shape_cast %5 : vector<8x8xbf16> to vector<1x8x8xbf16>
    %10 = vector.shape_cast %6 : vector<8x8xbf16> to vector<1x8x8xbf16>
    %11 = vector.shape_cast %7 : vector<8x8xbf16> to vector<1x8x8xbf16>
    %12 = vector.shape_cast %8 : vector<8x8xbf16> to vector<1x8x8xbf16>
    %13 = tpu.concatenate %9, %10, %11, %12 in 0 : vector<1x8x8xbf16>, vector<1x8x8xbf16>, vector<1x8x8xbf16>, vector<1x8x8xbf16> -> vector<4x8x8xbf16>
    %14 = vector.extract_strided_slice %4 {offsets = [0, 32], sizes = [8, 8], strides = [1, 1]} : vector<8x96xbf16> to vector<8x8xbf16>
    %15 = vector.extract_strided_slice %4 {offsets = [0, 40], sizes = [8, 8], strides = [1, 1]} : vector<8x96xbf16> to vector<8x8xbf16>
    %16 = vector.extract_strided_slice %4 {offsets = [0, 48], sizes = [8, 8], strides = [1, 1]} : vector<8x96xbf16> to vector<8x8xbf16>
    %17 = vector.extract_strided_slice %4 {offsets = [0, 56], sizes = [8, 8], strides = [1, 1]} : vector<8x96xbf16> to vector<8x8xbf16>
    %18 = vector.shape_cast %14 : vector<8x8xbf16> to vector<1x8x8xbf16>
    %19 = vector.shape_cast %15 : vector<8x8xbf16> to vector<1x8x8xbf16>
    %20 = vector.shape_cast %16 : vector<8x8xbf16> to vector<1x8x8xbf16>
    %21 = vector.shape_cast %17 : vector<8x8xbf16> to vector<1x8x8xbf16>
    %22 = tpu.concatenate %18, %19, %20, %21 in 0 : vector<1x8x8xbf16>, vector<1x8x8xbf16>, vector<1x8x8xbf16>, vector<1x8x8xbf16> -> vector<4x8x8xbf16>
    %23 = vector.extract_strided_slice %4 {offsets = [0, 64], sizes = [8, 8], strides = [1, 1]} : vector<8x96xbf16> to vector<8x8xbf16>
    %24 = vector.extract_strided_slice %4 {offsets = [0, 72], sizes = [8, 8], strides = [1, 1]} : vector<8x96xbf16> to vector<8x8xbf16>
    %25 = vector.extract_strided_slice %4 {offsets = [0, 80], sizes = [8, 8], strides = [1, 1]} : vector<8x96xbf16> to vector<8x8xbf16>
    %26 = vector.extract_strided_slice %4 {offsets = [0, 88], sizes = [8, 8], strides = [1, 1]} : vector<8x96xbf16> to vector<8x8xbf16>
    %27 = vector.shape_cast %23 : vector<8x8xbf16> to vector<1x8x8xbf16>
    %28 = vector.shape_cast %24 : vector<8x8xbf16> to vector<1x8x8xbf16>
    %29 = vector.shape_cast %25 : vector<8x8xbf16> to vector<1x8x8xbf16>
    %30 = vector.shape_cast %26 : vector<8x8xbf16> to vector<1x8x8xbf16>
    %31 = tpu.concatenate %27, %28, %29, %30 in 0 : vector<1x8x8xbf16>, vector<1x8x8xbf16>, vector<1x8x8xbf16>, vector<1x8x8xbf16> -> vector<4x8x8xbf16>
    "tpu.trace_start"() <{level = 10 : i32, message = "hqd,hkd->hqk"}> : () -> ()
    %cst_4 = arith.constant dense<0.000000e+00> : vector<4x8x8xf32>
    %32 = tpu.matmul %13, %22, %cst_4 {dimension_numbers = #tpu.dot_dimension_numbers<[2], [2], [1], [1], [0, 0, 0, 1, 1, 1], [0], [0]>} : vector<4x8x8xbf16>, vector<4x8x8xbf16>, vector<4x8x8xf32> -> vector<4x8x8xf32>
    "tpu.trace_stop"() : () -> ()
    %cst_5 = arith.constant dense<0xFF800000> : vector<4x8xf32>
    %33 = vector.multi_reduction <maximumf>, %32, %cst_5 [2] : vector<4x8x8xf32> to vector<4x8xf32>
    %34 = vector.shape_cast %33 : vector<4x8xf32> to vector<4x8x1xf32>
    %35 = vector.broadcast %34 : vector<4x8x1xf32> to vector<4x8x8xf32>
    %36 = arith.subf %32, %35 : vector<4x8x8xf32>
    %37 = math.exp %36 : vector<4x8x8xf32>
    %cst_6 = arith.constant dense<0.000000e+00> : vector<4x8xf32>
    %38 = vector.multi_reduction <add>, %37, %cst_6 [2] : vector<4x8x8xf32> to vector<4x8xf32>
    %39 = vector.shape_cast %38 : vector<4x8xf32> to vector<4x8x1xf32>
    %40 = tpu.reciprocal %39 {approx = true} : vector<4x8x1xf32> -> vector<4x8x1xf32>
    %41 = arith.truncf %37 : vector<4x8x8xf32> to vector<4x8x8xbf16>
    "tpu.trace_start"() <{level = 10 : i32, message = "hqk,hkd->hqd"}> : () -> ()
    %cst_7 = arith.constant dense<0.000000e+00> : vector<4x8x8xf32>
    %42 = tpu.matmul %41, %31, %cst_7 {dimension_numbers = #tpu.dot_dimension_numbers<[2], [1], [1], [2], [0, 0, 0, 1, 1, 2], [0], [0]>} : vector<4x8x8xbf16>, vector<4x8x8xbf16>, vector<4x8x8xf32> -> vector<4x8x8xf32>
    "tpu.trace_stop"() : () -> ()
    %43 = vector.broadcast %40 : vector<4x8x1xf32> to vector<4x8x8xf32>
    %44 = arith.mulf %42, %43 : vector<4x8x8xf32>
    %45 = vector.extract_strided_slice %44 {offsets = [0, 0, 0], sizes = [1, 8, 8], strides = [1, 1, 1]} : vector<4x8x8xf32> to vector<1x8x8xf32>
    %46 = vector.shape_cast %45 : vector<1x8x8xf32> to vector<8x8xf32>
    %47 = vector.extract_strided_slice %44 {offsets = [1, 0, 0], sizes = [1, 8, 8], strides = [1, 1, 1]} : vector<4x8x8xf32> to vector<1x8x8xf32>
    %48 = vector.shape_cast %47 : vector<1x8x8xf32> to vector<8x8xf32>
    %49 = vector.extract_strided_slice %44 {offsets = [2, 0, 0], sizes = [1, 8, 8], strides = [1, 1, 1]} : vector<4x8x8xf32> to vector<1x8x8xf32>
    %50 = vector.shape_cast %49 : vector<1x8x8xf32> to vector<8x8xf32>
    %51 = vector.extract_strided_slice %44 {offsets = [3, 0, 0], sizes = [1, 8, 8], strides = [1, 1, 1]} : vector<4x8x8xf32> to vector<1x8x8xf32>
    %52 = vector.shape_cast %51 : vector<1x8x8xf32> to vector<8x8xf32>
    %53 = tpu.concatenate %46, %48, %50, %52 in 1 : vector<8x8xf32>, vector<8x8xf32>, vector<8x8xf32>, vector<8x8xf32> -> vector<8x32xf32>
    %54 = arith.truncf %53 : vector<8x32xf32> to vector<8x32xbf16>
    %c0_8 = arith.constant 0 : index
    %c0_9 = arith.constant 0 : index
    %55 = vector.load %arg3[%c0_8, %c0_9] : memref<32x32xbf16, #tpu.memory_space<vmem>>, vector<32x32xbf16>
    %cst_10 = arith.constant dense<0.000000e+00> : vector<8x32xf32>
    %56 = tpu.matmul %54, %55, %cst_10 {dimension_numbers = #tpu.dot_dimension_numbers<[1], [0], [0], [1], [0, 0, 1, 1], [], []>} : vector<8x32xbf16>, vector<32x32xbf16>, vector<8x32xf32> -> vector<8x32xf32>
    %c0_11 = arith.constant 0 : index
    %c0_12 = arith.constant 0 : index
    %57 = vector.load %arg4[%c0_11, %c0_12] : memref<1x32xf32, #tpu.memory_space<vmem>>, vector<1x32xf32>
    %58 = vector.broadcast %57 : vector<1x32xf32> to vector<8x32xf32>
    %59 = arith.addf %56, %58 : vector<8x32xf32>
    %c0_13 = arith.constant 0 : index
    %c0_14 = arith.constant 0 : index
    %c0_15 = arith.constant 0 : index
    %60 = vector.load %arg5[%c0_13, %c0_14, %c0_15] : memref<1x8x32xf32, #tpu.memory_space<vmem>>, vector<1x8x32xf32>
    %61 = vector.shape_cast %60 : vector<1x8x32xf32> to vector<8x32xf32>
    %62 = vector.shape_cast %59 : vector<8x32xf32> to vector<1x8x32xf32>
    tpu.vector_store %arg5[%c0_13, %c0_14, %c0_15], %62 {strides = array<i32>} : memref<1x8x32xf32, #tpu.memory_space<vmem>>, vector<1x8x32xf32>,
    return
  }
  func.func @transform_0(%arg0: i32) -> (i32, i32, i32) {
    %c0_i32 = arith.constant 0 : i32
    %c0_i32_0 = arith.constant 0 : i32
    %c0_i32_1 = arith.constant 0 : i32
    return %arg0, %c0_i32, %c0_i32_0 : i32, i32, i32
  }
  func.func @transform_1(%arg0: i32) -> (i32, i32) {
    %c0_i32 = arith.constant 0 : i32
    %c0_i32_0 = arith.constant 0 : i32
    %c0_i32_1 = arith.constant 0 : i32
    return %c0_i32, %c0_i32_0 : i32, i32
  }
  func.func @transform_2(%arg0: i32) -> (i32, i32) {
    %c0_i32 = arith.constant 0 : i32
    %c0_i32_0 = arith.constant 0 : i32
    %c0_i32_1 = arith.constant 0 : i32
    return %c0_i32, %c0_i32_0 : i32, i32
  }
  func.func @transform_3(%arg0: i32) -> (i32, i32) {
    %c0_i32 = arith.constant 0 : i32
    %c0_i32_0 = arith.constant 0 : i32
    %c0_i32_1 = arith.constant 0 : i32
    return %c0_i32, %c0_i32_0 : i32, i32
  }
  func.func @transform_4(%arg0: i32) -> (i32, i32, i32) {
    %c0_i32 = arith.constant 0 : i32
    %c0_i32_0 = arith.constant 0 : i32
    %c0_i32_1 = arith.constant 0 : i32
    return %arg0, %c0_i32, %c0_i32_0 : i32, i32, i32
  }
}

</mosaic_0001>

<bundles_post_ra>
// kernel: attention_forward.1
= control target key start
LH: loop header
LB: loop body
LE: loop exit
PB: predicated region body
PF: predicated region fallthrough
CT: control target
= control target key end

     0   :  { %9 = vsyncpa [#allocation3], 0  ;;  %s1425_s0 = inlined_call_operand.vmem [shape: bf16[2,8,32], index: 0, kind: input, shape index: {}]   ;;  %s1426_s1 = inlined_call_operand.vmem [shape: bf16[32,96], index: 1, kind: input, shape index: {}]   ;;  %s1427_s2 = inlined_call_operand.hbm [shape: bf16[32,32], index: 2, kind: input, shape index: {}]   ;;  %s1428_s3 = inlined_call_operand.vmem [shape: f32[1,32], index: 3, kind: input, shape index: {}]   ;;  %s1429_s4 = inlined_call_operand.hbm [shape: f32[2,8,32], index: 4, kind: output, shape index: {}]  }
   0x1   :  { %10 = vsyncpa [#allocation4], 0 }
   0x2   :  { %12 = vsyncpa [#allocation4 + $0x1], 0  ;;  %s1212_s15 = smov 0   ;;  %s1214_s16 = smov 0  }
   0x3   :  { %s1216_s17 = smov 0   ;;  %s1218_s18 = smov 0  }
   0x4 LB: > { %s1233_s19 = sadd.s32 4294967295, %s1171_s18   ;;  %s882_s20 = sadd.s32 4294967294, %s1171_s18   ;;  %s1171_s18 = sphi %s1218_s18, %s1445_s18   ;;  %s1167_s17 = sphi %s1216_s17, %s1444_s17   ;;  %s1163_s16 = sphi %s1214_s16, %s1443_s16   ;;  %s1159_s15 = sphi %s1212_s15, %s1442_s15  }
   0x5   : > { %s1237_s21 = sadd.s32 1, %s1171_s18   ;;  %s114_s22 = sadd.s32 1, %s1167_s17 }
   0x6   : > { %s111_s23 = ssub.s32 %s1171_s18, %s1237_s21  ;;  %p124_p0 = scmp.ne.s32.totalorder %s1167_s17, %s1163_s16 }
   0x7   : > { %p112_p1 = scmp.eq.s32.totalorder %s111_s23, 0  ;;  %p125_p2 = scmp.eq.s32.totalorder %s1233_s19, 1 }
   0x8   : > { %p130_p3 = scmp.ne.s32.totalorder %s1163_s16, %s1159_s15  ;;  %p131_p4 = scmp.eq.s32.totalorder %s882_s20, 1 }
   0x9   : > { %s1248_s24 = scalar_select %p112_p1, %s1167_s17, %s114_s22  }
   0xa   : > { %p1250_p5 = por %p125_p2, %p124_p0  ;;  %p1254_p6 = por %p131_p4, %p130_p3 }
   0xb   : > { %p883_p7 = scmp.ge.s32.totalorder %s1171_s18, 1  ;;  %p138_p8 = scmp.lt.s32.totalorder %s1171_s18, 3 }
   0xc   : > { %s1433_s25 = scalar_select %p1250_p5, 1, 0 }
   0xd   : > { %s1434_s26 = scalar_select %p1254_p6, 1, 0 }
   0xe   : > { %p1430_p9 = scmp.eq.s32.totalorder %s1233_s19, 0  ;;  %p1261_p10 = pnand %p883_p7, %p138_p8 }
   0xf   : > { %s1173_s28 = smov [#allocation2]   ;;  %s1077_s7 = scalar_lea.hbm %s1427_s2, 256 }
  0x10   : > { %s1435_s27 = scalar_select %p1261_p10, 1, 0 }
  0x11   : > { %s153_s29 = sshll.u32 %s1173_s28, 4  ;;  %p1001_p11 = pneg %p1261_p10  ;;  %s154_s29 = int_to_ptr.vmem [resolvable:$true] %s153_s29 }
  0x12   : > { %p1078_p13 = scmp.ne.s32.totalorder %s1427_s2, %s1077_s7  ;;  %p1084_p3 = scmp.lt.u32.totalorder %s1077_s7, %s1427_s2 }
  0x13   : > { %p1269_p12 = pnand %p1430_p9, %p1001_p11 }
  0x15   : > { %p1079_p0 = pneg %p1269_p12 }
  0x17   : > { %p1080_p1 = pnand %p1079_p0, %p1078_p13 }
  0x19   : > { %p1081_p2 = pneg %p1080_p1 }
  0x1b   : > { %p1086_p4 = pnand %p1084_p3, %p1081_p2 }
  0x1d   : > { %1089 = shalt.err (!%p1086_p4)
}
  0x1e   : > { %s1090_s12 = scalar_lea.vmem %s154_s29, 256  ;;  %p1098_p9 = scmp.lt.s32.totalorder %s154_s29, %s154_s29 }
  0x1f   : > { %p1091_p7 = scmp.ne.s32.totalorder %s154_s29, %s1090_s12  ;;  %p1099_p6 = scmp.lt.s32.totalorder %s1090_s12, %s1090_s12 }
  0x21   : > { %p1093_p8 = pnand %p1091_p7, %p1079_p0  ;;  %p1100_p5 = por %p1099_p6, %p1098_p9 }
  0x23   : > { %p1094_p11 = pneg %p1093_p8 }
  0x25   : > { %p1101_p10 = pnand %p1100_p5, %p1094_p11 }
  0x27   : > { %1104 = shalt.err (!%p1101_p10)
}
  0x28   : > { %s1174_s13 = smov 64   ;;  %s1175_s14 = smov 4  }
  0x29   : > { %1004 = dma.hbm_to_vmem [thread:$0]  (!%p1269_p12), %s1427_s2, 256, %s154_s29, [#allocation3], %s1174_s13, %s1174_s13, %s1175_s14  }
  0x2a   : > { %p1437_p13 = scmp.ne.s32.totalorder %s1435_s27, 0 }
  0x2b   : > { %p1438_p1 = scmp.eq.s32.totalorder (!%p1437_p13), %s1233_s19, 0 }
  0x2c   : > { %179 = sbr.rel (%p1437_p13) target bundleno = 1454 (0x5ae), region = 36 }
  0x33   : > { %1150 = dma.done.wait (%p1438_p1), [#allocation3], 256   ;;  %p1439_p0 = pmov %p1438_p1 }
  0x34   : > { %p204_p5 = scmp.lt.s32.totalorder %s1233_s19, 1  ;;  %v1176_v0 = vmov 0.0   ;;  %vm1177_vm0 = vmmov 0   ;;  %v1057_v1 = vld [vmem:[%s1426_s1] sm:$0xff]   ;;  %v1058_v2 = vld [vmem:[%s1426_s1 + $0x8] sm:$0xff]   ;;  %vm226_vm1 = vcmask 261120  }
  0x35   : > { %1152 = vsyncadd (%p1439_p0), [#allocation3], 4294967040  ;;  %931 = vmatprep.subr.bf16.mxu0 %v1176_v0  ;;  %935 = vmatprep.mubr.msk.bf16.mxu0 %vm1177_vm0, %v1176_v0  ;;  %s1178_s9 = smov 104   ;;  %s1179_s10 = smov 120   ;;  %vm280_vm2 = vcmask 64512   ;;  %vm520_vm3 = vcmask 1043456  }
  0x36   : > { %939 = vmatprep.subr.bf16.mxu1 %v1176_v0  ;;  %941 = vmatprep.mubr.msk.bf16.mxu1 %vm1177_vm0, %v1176_v0  ;;  %s205_s23 = scalar_select %p204_p5, %s1233_s19, 1  ;;  %vm725_vm4 = vcmask 130048   ;;  %vm727_vm5 = vcmask 195584  }
  0x37   : > { %932 = vmatpush3.bf16.msra.mxu0 %v1057_v1  ;;  %s1180_s11 = smov 96   ;;  %s1181_s12 = smov 112  }
  0x38   : > { %s889_s29 = sshll.u32 %s205_s23, 2  ;;  %933 = vmatprep.subr.bf16.mxu0 %v1176_v0  ;;  %s1182_s13 = smov 64  }
  0x39   : > { %s207_s8 = scalar_lea.vmem %s1425_s0, %s889_s29  ;;  %s1183_s14 = smov 8  }
  0x3a   : > { %v209_v3 = vld [vmem:[%s207_s8] sm:$0xf]  ;;  %s1184_s20 = smov 16   ;;  %s1185_s22 = smov 24  }
  0x3b   : > { %934 = vmatpush3.bf16.msra.mxu0 %v1058_v2  ;;  %s201_s23 = sand.u32 1, %s1163_s16   ;;  %s906_s30 = sshll.u32 %s1233_s19, 7 }
  0x3c   : > { %945 = vmatprep.subr.bf16.mxu0 %v1176_v0  ;;  %s888_s27 = sshll.u32 %s201_s23, 3  ;;  %s798_s19 = scalar_lea.sflag [#allocation4], %s201_s23 }
  0x3d   : > { %s203_s5 = scalar_lea.vmem [#allocation5], %s888_s27  ;;  %p1440_p9 = scmp.ne.s32.totalorder %s1433_s25, 0 }
  0x3e   : > { %936 = vmatmul.mubr.msk.bf16.vlgmr.msra.gmra.mrb[0].mxu0 %vm226_vm1, %v209_v3  ;;  %s811_s6 = sshll.u32 %s203_s5, 4  ;;  %s1384_s6 = int_to_ptr.vmem [resolvable:$true] %s811_s6 }
  0x3f   : > { %947 = vmatprep.mubr.msk.bf16.mxu0 %vm1177_vm0, %v1176_v0 }
 0x111   : > { %v264_v4 = vpop.f32.mrb[0].mxu0 }
 0x112   : > { %v270_v5 = vpack.c.bf16 %v264_v4, %v264_v4  ;;  %v937_v6 = vpop.f32.mrb[1].mxu0 }
 0x113   : > { %v267_v7 = vpop.f32.mrb[2].mxu0 }
 0x114   : > { %276 = vrot.lane.b32.xlu1 %v270_v5, %s1178_s9  ;;  %272 = vrot.lane.b32.xlu0 %v270_v5, %s1179_s10  ;;  %v938_v8 = vpop.f32.mrb[3].mxu0  ;;  %s1382_s9 = scalar_lea.hbm %s1429_s4, %s906_s30  ;;  %s1105_s10 = scalar_lea.vmem %s1384_s6, 128 }
 0x115   : > { %p1106_p6 = scmp.ne.s32.totalorder %s1384_s6, %s1105_s10 }
 0x117   : > { %p1107_p10 = pnand %p1106_p6, %p1440_p9 }
 0x118   : > { %278 = vrot.lane.b32.xlu1 %v270_v5, %s1180_s11  ;;  %274 = vrot.lane.b32.xlu0 %v270_v5, %s1181_s12 }
 0x119   : > { %p1108_p12 = pneg %p1107_p10 }
 0x186   : > { %v1317_v9 = vpop.permute.xlu1 %276  ;;  %v273_v10 = vpop.permute.xlu0 %272 }
 0x187   : > { %327 = vrot.lane.b32.xlu0 %v273_v10, %s1180_s11 }
 0x18a   : > { %v279_v11 = vpop.permute.xlu1 %278  ;;  %v275_v12 = vpop.permute.xlu0 %274 }
 0x18b   : > { %423 = vrot.lane.b32.xlu0 %v1317_v9, %s1180_s11  ;;  %375 = vrot.lane.b32.xlu1 %v275_v12, %s1180_s11  ;;  %v285_v13 = vsel %vm280_vm2, %v279_v11, 0  ;;  %s1186_s11 = smov [#allocation5]  }
 0x18c   : > { %940 = vmatpush3.bf16.xpose.msra.mxu1 %v285_v13  ;;  %s1109_s12 = sshll.u32 %s1186_s11, 4  ;;  %s1110_s12 = int_to_ptr.vmem [resolvable:$false] %s1109_s12 }
 0x18d   : > { %951 = vmatprep.subr.bf16.mxu1 %v1176_v0  ;;  %p1112_p2 = scmp.lt.s32.totalorder %s1384_s6, %s1110_s12 }
 0x18f   : > { %515 = vrot.lane.b32.xlu0 %v270_v5, %s1182_s13  ;;  %564 = vrot.lane.b32.xlu1 %v273_v10, %s1182_s13 }
 0x193   : > { %942 = vmatmul.mubr.msk.bf16.vlgmr.msra.gmra.mrb[0].mxu1 %vm280_vm2, %v270_v5 }
 0x194   : > { %953 = vmatprep.mubr.msk.bf16.mxu1 %vm1177_vm0, %v1176_v0 }
 0x1f9   : > { %v328_v14 = vpop.permute.xlu0 %327 }
 0x1fa   : > { %v333_v15 = vsel %vm280_vm2, %v328_v14, 0 }
 0x1fb   : > { %946 = vmatpush3.bf16.xpose.msra.mxu0 %v333_v15  ;;  %v1059_v15 = vld [vmem:[#allocation2] sm:$0xff]  }
 0x1fc   : > { %957 = vmatprep.subr.bf16.mxu0 %v1176_v0 }
 0x1fd   : > { %v376_v16 = vpop.permute.xlu1 %375  ;;  %v424_v17 = vpop.permute.xlu0 %423 }
 0x1fe   : > { %v381_v18 = vsel %vm280_vm2, %v376_v16, 0  ;;  %v429_v19 = vsel %vm280_vm2, %v424_v17, 0  ;;  %v1060_v17 = vld [vmem:[#allocation2 + $0x8] sm:$0xff]  }
 0x1ff   : > { %952 = vmatpush3.bf16.xpose.msra.mxu1 %v381_v18 }
 0x200   : > { %963 = vmatprep.subr.bf16.mxu1 %v1176_v0 }
 0x201   : > { %v516_v20 = vpop.permute.xlu0 %515  ;;  %v565_v22 = vpop.permute.xlu1 %564 }
 0x202   : > { %948 = vmatmul.mubr.msk.bf16.vlgmr.msra.gmra.mrb[4].mxu0 %vm280_vm2, %v273_v10  ;;  %v522_v21 = vsel %vm520_vm3, %v516_v20, 0  ;;  %v570_v23 = vsel %vm520_vm3, %v565_v22, 0 }
 0x203   : > { %958 = vmatpush3.bf16.xpose.msra.mxu0 %v429_v19  ;;  %959 = vmatprep.mubr.msk.bf16.mxu0 %vm1177_vm0, %v1176_v0 }
 0x204   : > { %969 = vmatprep.subr.bf16.mxu0 %v1176_v0 }
 0x206   : > { %954 = vmatmul.mubr.msk.bf16.vlgmr.msra.gmra.mrb[4].mxu1 %vm280_vm2, %v275_v12 }
 0x207   : > { %964 = vmatpush3.bf16.msra.mxu1 %v522_v21  ;;  %965 = vmatprep.mubr.msk.bf16.mxu1 %vm1177_vm0, %v1176_v0 }
 0x208   : > { %975 = vmatprep.subr.bf16.mxu1 %v1176_v0 }
 0x20a   : > { %960 = vmatmul.mubr.msk.bf16.vlgmr.msra.gmra.mrb[8].mxu0 %vm280_vm2, %v1317_v9 }
 0x20b   : > { %970 = vmatpush3.bf16.msra.mxu0 %v570_v23  ;;  %971 = vmatprep.mubr.msk.bf16.mxu0 %vm1177_vm0, %v1176_v0 }
 0x20c   : > { %981 = vmatprep.subr.bf16.mxu0 %v1176_v0 }
 0x266   : > { %v321_v24 = vpop.f32.mrb[0].mxu1 }
 0x267   : > { %v943_v25 = vpop.f32.mrb[1].mxu1  ;;  %v471_v26 = vsel %vm280_vm2, %v321_v24, -inf }
 0x268   : > { %v324_v27 = vpop.f32.mrb[2].mxu1  ;;  %472 = vmax.xlane.f32.xlu1 %v471_v26 }
 0x269   : > { %v944_v28 = vpop.f32.mrb[3].mxu1 }
 0x2d5   : > { %v369_v29 = vpop.f32.mrb[4].mxu0 }
 0x2d6   : > { %v949_v30 = vpop.f32.mrb[5].mxu0  ;;  %v474_v31 = vsel %vm280_vm2, %v369_v29, -inf }
 0x2d7   : > { %475 = vmax.xlane.f32.xlu0 %v474_v31  ;;  %v372_v32 = vpop.f32.mrb[6].mxu0 }
 0x2d8   : > { %v950_v33 = vpop.f32.mrb[7].mxu0 }
 0x2d9   : > { %v417_v34 = vpop.f32.mrb[4].mxu1 }
 0x2da   : > { %v955_v35 = vpop.f32.mrb[5].mxu1  ;;  %v477_v36 = vsel %vm280_vm2, %v417_v34, -inf }
 0x2db   : > { %v420_v37 = vpop.f32.mrb[6].mxu1  ;;  %478 = vmax.xlane.f32.xlu0 %v477_v36 }
 0x2dc   : > { %v956_v38 = vpop.f32.mrb[7].mxu1 }
 0x2dd   : > { %v465_v39 = vpop.f32.mrb[8].mxu0 }
 0x2de   : > { %v961_v40 = vpop.f32.mrb[9].mxu0  ;;  %v480_v41 = vsel %vm280_vm2, %v465_v39, -inf }
 0x2df   : > { %481 = vmax.xlane.f32.xlu1 %v480_v41  ;;  %v468_v42 = vpop.f32.mrb[10].mxu0 }
 0x2e0   : > { %v962_v43 = vpop.f32.mrb[11].mxu0 }
 0x2f0   : > { %612 = vrot.lane.b32.xlu1 %v275_v12, %s1182_s13 }
 0x2f1   : > { %660 = vrot.lane.b32.xlu0 %v1317_v9, %s1182_s13  ;;  %s1111_s13 = scalar_lea.vmem %s1110_s12, 256 }
 0x2f2   : > { %p1113_p3 = scmp.lt.s32.totalorder %s1111_s13, %s1105_s10 }
 0x2f4   : > { %p1114_p4 = por %p1113_p3, %p1112_p2 }
 0x2f5   : > { %v473_v44 = vpop.xlane.xlu1 %472 }
 0x2f6   : > { %v483_v45 = vsub.f32 %v321_v24, %v473_v44  ;;  %p1115_p7 = pnand %p1114_p4, %p1108_p12 }
 0x2f8   : > { %v487_v46 = vmul.f32 1.442695, %v483_v45  ;;  %v901_v45 = vld [vmem:[%s1428_s3] ss:$0 sm:$0xff] }
 0x2fa   : > { %1061 = vpow2.f32 %v487_v46 }
 0x304   : > { %v1062_v47 = vpop.eup %1061 }
 0x305   : > { %v511_v48 = vpack.c.bf16 %v1062_v47, %v1062_v47  ;;  %v495_v4 = vsel %vm280_vm2, %v1062_v47, 0.0 }
 0x307   : > { %966 = vmatmul.mubr.msk.bf16.vlgmr.msra.gmra.mrb[8].mxu1 %vm280_vm2, %v511_v48 }
 0x308   : > { %977 = vmatprep.mubr.msk.bf16.mxu1 %vm1177_vm0, %v1176_v0 }
 0x364   : > { %v476_v49 = vpop.xlane.xlu0 %475 }
 0x365   : > { %v484_v50 = vsub.f32 %v369_v29, %v476_v49 }
 0x367   : > { %v489_v51 = vmul.f32 1.442695, %v484_v50 }
 0x368   : > { %v479_v52 = vpop.xlane.xlu0 %478 }
 0x369   : > { %1063 = vpow2.f32 %v489_v51  ;;  %v485_v53 = vsub.f32 %v417_v34, %v479_v52 }
 0x36b   : > { %v491_v54 = vmul.f32 1.442695, %v485_v53 }
 0x36c   : > { %v482_v55 = vpop.xlane.xlu1 %481  ;;  %v661_v61 = vpop.permute.xlu0 %660 }
 0x36d   : > { %1065 = vpow2.f32 %v491_v54  ;;  %v486_v56 = vsub.f32 %v465_v39, %v482_v55  ;;  %v666_v1 = vsel %vm520_vm3, %v661_v61, 0 }
 0x36f   : > { %v493_v57 = vmul.f32 1.442695, %v486_v56 }
 0x370   : > { %v613_v58 = vpop.permute.xlu1 %612 }
 0x371   : > { %1067 = vpow2.f32 %v493_v57  ;;  %v618_v59 = vsel %vm520_vm3, %v613_v58, 0 }
 0x372   : > { %976 = vmatpush3.bf16.msra.mxu1 %v618_v59 }
 0x373   : > { %v1064_v60 = vpop.eup %1063  ;;  %987 = vmatprep.subr.bf16.mxu1 %v1176_v0 }
 0x374   : > { %v498_v62 = vsel %vm280_vm2, %v1064_v60, 0.0  ;;  %v512_v63 = vpack.c.bf16 %v1064_v60, %v1064_v60 }
 0x375   : > { %499 = vadd.xlane.f32.xlu1 %v498_v62 }
 0x376   : > { %972 = vmatmul.mubr.msk.bf16.vlgmr.msra.gmra.mrb[12].mxu0 %vm280_vm2, %v512_v63 }
 0x377   : > { %v1066_v2 = vpop.eup %1065  ;;  %982 = vmatpush3.bf16.msra.mxu0 %v666_v1  ;;  %983 = vmatprep.mubr.msk.bf16.mxu0 %vm1177_vm0, %v1176_v0 }
 0x378   : > { %v501_v3 = vsel %vm280_vm2, %v1066_v2, 0.0  ;;  %v513_v5 = vpack.c.bf16 %v1066_v2, %v1066_v2 }
 0x379   : > { %502 = vadd.xlane.f32.xlu0 %v501_v3  ;;  %496 = vadd.xlane.f32.xlu1 %v495_v4 }
 0x37a   : > { %978 = vmatmul.mubr.msk.bf16.vlgmr.msra.gmra.mrb[12].mxu1 %vm280_vm2, %v513_v5 }
 0x37b   : > { %v1068_v6 = vpop.eup %1067  ;;  %991 = vmatprep.mubr.msk.bf16.mxu1 %vm1177_vm0, %v1176_v0  ;;  %988 = vmatpush3.bf16.msra.mxu1 %v1059_v15 }
 0x37c   : > { %v504_v7 = vsel %vm280_vm2, %v1068_v6, 0.0  ;;  %v514_v8 = vpack.c.bf16 %v1068_v6, %v1068_v6  ;;  %989 = vmatprep.subr.bf16.mxu1 %v1176_v0 }
 0x37d   : > { %505 = vadd.xlane.f32.xlu0 %v504_v7 }
 0x37e   : > { %984 = vmatmul.mubr.msk.bf16.vlgmr.msra.gmra.mrb[16].mxu0 %vm280_vm2, %v514_v8 }
 0x37f   : > { %990 = vmatpush3.bf16.msra.mxu1 %v1060_v17 }
 0x3da   : > { %v558_v9 = vpop.f32.mrb[8].mxu1 }
 0x3db   : > { %v967_v10 = vpop.f32.mrb[9].mxu1 }
 0x3dc   : > { %v561_v11 = vpop.f32.mrb[10].mxu1 }
 0x3dd   : > { %v968_v12 = vpop.f32.mrb[11].mxu1 }
 0x402   : > { %v500_v13 = vpop.xlane.xlu1 %499 }
 0x403   : > { %1069 = vrcp.f32 %v500_v13 }
 0x406   : > { %v503_v14 = vpop.xlane.xlu0 %502  ;;  %v497_v35 = vpop.xlane.xlu1 %496 }
 0x407   : > { %1071 = vrcp.f32 %v503_v14 }
 0x40a   : > { %v506_v16 = vpop.xlane.xlu0 %505 }
 0x40b   : > { %1073 = vrcp.f32 %v506_v16 }
 0x40c   : > { %1075 = vrcp.f32 %v497_v35 }
 0x40d   : > { %v1070_v18 = vpop.eup %1069 }
 0x411   : > { %v1072_v24 = vpop.eup %1071 }
 0x415   : > { %v1074_v0 = vpop.eup %1073 }
 0x416   : > { %v1076_v36 = vpop.eup %1075 }
 0x417   : > { %v708_v39 = vmul.f32 %v1076_v36, %v558_v9 }
 0x449   : > { %v606_v19 = vpop.f32.mrb[12].mxu0 }
 0x44a   : > { %v709_v20 = vmul.f32 %v1070_v18, %v606_v19  ;;  %v973_v21 = vpop.f32.mrb[13].mxu0 }
 0x44b   : > { %v609_v22 = vpop.f32.mrb[14].mxu0 }
 0x44c   : > { %713 = vrot.lane.b32.xlu0 %v709_v20, %s1183_s14  ;;  %v974_v23 = vpop.f32.mrb[15].mxu0 }
 0x44d   : > { %v654_v25 = vpop.f32.mrb[12].mxu1 }
 0x44e   : > { %v710_v26 = vmul.f32 %v1072_v24, %v654_v25  ;;  %v979_v27 = vpop.f32.mrb[13].mxu1 }
 0x44f   : > { %v657_v28 = vpop.f32.mrb[14].mxu1 }
 0x450   : > { %717 = vrot.lane.b32.xlu1 %v710_v26, %s1184_s20  ;;  %v980_v29 = vpop.f32.mrb[15].mxu1 }
 0x451   : > { %v702_v30 = vpop.f32.mrb[16].mxu0 }
 0x452   : > { %v711_v31 = vmul.f32 %v1074_v0, %v702_v30  ;;  %v985_v32 = vpop.f32.mrb[17].mxu0 }
 0x453   : > { %v705_v33 = vpop.f32.mrb[18].mxu0 }
 0x454   : > { %721 = vrot.lane.b32.xlu1 %v711_v31, %s1185_s22  ;;  %v986_v34 = vpop.f32.mrb[19].mxu0 }
 0x4be   : > { %v714_v37 = vpop.permute.xlu0 %713 }
 0x4bf   : > { %v724_v40 = vsel %vm280_vm2, %v708_v39, %v714_v37 }
 0x4c2   : > { %v718_v38 = vpop.permute.xlu1 %717 }
 0x4c3   : > { %v726_v41 = vsel %vm725_vm4, %v724_v40, %v718_v38 }
 0x4c6   : > { %v722_v42 = vpop.permute.xlu1 %721 }
 0x4c7   : > { %v728_v43 = vsel %vm727_vm5, %v726_v41, %v722_v42 }
 0x4c8   : > { %v729_v44 = vpack.c.bf16 %v728_v43, %v728_v43 }
 0x4ca   : > { %992 = vmatmul.mubr.msk.bf16.vlgmr.msra.gmra.mrb[16].mxu1 %vm226_vm1, %v729_v44 }
 0x59d   : > { %v790_v46 = vpop.f32.mrb[16].mxu1 }
 0x59e   : > { %v791_v47 = vadd.f32 %v901_v45, %v790_v46  ;;  %v993_v48 = vpop.f32.mrb[17].mxu1 }
 0x59f   : > { %v793_v49 = vpop.f32.mrb[18].mxu1 }
 0x5a0   : > { %v994_v50 = vpop.f32.mrb[19].mxu1  ;;  %796 = vst.msk [vmem:[%s203_s5] sm:$0xff] %vm226_vm1, %v791_v47 }
 0x5a1   : > { %1118 = shalt.err (!%p1115_p7)
}
 0x5a2   : > { %s1119_s14 = scalar_lea.hbm %s1382_s9, 128  ;;  %s1123_s23 = scalar_lea.hbm %s1429_s4, 256 }
 0x5a3   : > { %p1120_p8 = scmp.ne.s32.totalorder %s1382_s9, %s1119_s14  ;;  %p1124_p1 = scmp.lt.u32.totalorder %s1382_s9, %s1429_s4 }
 0x5a4   : > { %p1125_p0 = scmp.lt.u32.totalorder %s1123_s23, %s1119_s14  ;;  %p1127_p6 = scmp.lt.u32.totalorder %s1119_s14, %s1382_s9 }
 0x5a5   : > { %p1121_p11 = pnand %p1120_p8, %p1440_p9 }
 0x5a6   : > { %p1126_p5 = por %p1125_p0, %p1124_p1 }
 0x5a7   : > { %p1122_p13 = pneg %p1121_p11 }
 0x5a8   : > { %p1128_p10 = por %p1127_p6, %p1126_p5 }
 0x5aa   : > { %p1129_p12 = pnand %p1128_p10, %p1122_p13 }
 0x5ac   : > { %1132 = shalt.err (!%p1129_p12)
}
 0x5ad   : > { %999 = dma.vmem_to_hbm [thread:$0]  (%p1440_p9), %s1384_s6, 128, %s1382_s9, %s798_s19  }
 0x5ae PF: > { %p1011_p2 = scmp.ge.s32.totalorder %s1171_s18, 2  ;;  %s823_s29 = sand.u32 1, %s1159_s15  }
 0x5af   : > { %p1441_p3 = scmp.ne.s32.totalorder %s1434_s26, 0  ;;  %s824_s30 = scalar_lea.sflag [#allocation4], %s823_s29 }
 0x5b1   : > { %p1006_p4 = pnand %p1011_p2, %p1441_p3 }
 0x5b3   : > { %1154 = dma.done.wait (!%p1006_p4), %s824_s30, 128  }
 0x5b4   : > { %1156 = vsyncadd (!%p1006_p4), %s824_s30, 4294967168  ;;  %p15_p7 = scmp.ge.s32.totalorder %s1237_s21, 4   ;;  %s1442_s15 = smov %s1163_s16 }
 0x5b5   : > { %s1443_s16 = smov %s1167_s17  ;;  %s1444_s17 = smov %s1248_s24 }
 0x5b6   : > { %s1445_s18 = smov %s1237_s21  ;;  %17 = sbr.rel (!%p15_p7) target bundleno = 4 (0x4), region = 76 }
 0x5bd   :  { %829 = vsyncpa [#allocation3], 1 }
 0x5be   :  { %831 = vsyncpa [#allocation3 + $0x1], 1 }
 0x5bf   :  { %832 = vsyncpa [#allocation4], 1 }
 0x5c0   :  { %834 = vsyncpa [#allocation4 + $0x1], 1 }

</bundles_post_ra>
